<compile_context>
chip_gen: v7x
topology: tpu7x:2x2x1
jax: 0.10.0
libtpu: 0.0.40
codegen_flags: <defaults>
</compile_context>

<pallas_src>
import functools

import jax
import jax.numpy as jnp
from jax.experimental import pallas as pl
from jax.experimental.pallas import tpu as pltpu

_LANE = 128          # vreg lane width (last dim)
_SUBLANE = 8         # vreg sublane width (second-to-last dim)
_PREFERRED_TILE = 512


def _pad_to(n, m):
    return ((n + m - 1) // m) * m


def _choose_tile_m(batch):
    """Row-tile size: single tile for tiny batches, ~512-row tiles (and at
    least 2 grid steps, for v7x's two TensorCores) for large batches."""
    if batch <= 32:
        return _pad_to(batch, _SUBLANE)
    return min(_PREFERRED_TILE, _pad_to(pl.cdiv(batch, 2), 16))


# -----------------------------------------------------------------------------
# Kernel
# -----------------------------------------------------------------------------
def _policy_kernel(out_pads, *refs):
    # refs layout: x_ref, w0, ..., wL (bf16, (in_pad, out_pad)),
    #              bias_packed (f32, (L+1, max_pad)), out_ref
    x_ref = refs[0]
    out_ref = refs[-1]
    b_ref = refs[-2]
    w_refs = refs[1:-2]
    num_hidden = len(w_refs) - 1

    h = x_ref[...]  # bf16 (tile_m, num_features)

    # Hidden Linear + ReLU stack: bf16 MXU matmul, f32 accumulate + epilogue.
    for l in range(num_hidden):
        y = jnp.dot(h, w_refs[l][...], preferred_element_type=jnp.float32)
        y = y + b_ref[l:l + 1, :out_pads[l]]
        h = jnp.maximum(y, 0.0).astype(jnp.bfloat16)

    # Actor head. Padded action lanes have bias -1e30 -> exp() == 0.
    logits = jnp.dot(h, w_refs[-1][...], preferred_element_type=jnp.float32)
    logits = logits + b_ref[num_hidden:num_hidden + 1, :out_pads[-1]]

    # Numerically stable softmax over the last dim; divide on the EUP slot.
    m = jnp.max(logits, axis=-1, keepdims=True)
    e = jnp.exp(logits - m)
    denom = jnp.sum(e, axis=-1, keepdims=True)
    out_ref[...] = e * pl.reciprocal(denom, approx=True)


# -----------------------------------------------------------------------------
# One-time parameter preparation (hoisted out of the per-call path)
# -----------------------------------------------------------------------------
def init_policy_params(key, num_features, num_actions, num_layers, hidden_sizes):
    """PyTorch-Linear-shaped parameters: weight (out, in), bias (out,)."""
    params = []
    in_dim = num_features
    dims = [hidden_sizes] * num_layers + [num_actions]
    for out_dim in dims:
        key, wk, bk = jax.random.split(key, 3)
        bound = 1.0 / jnp.sqrt(in_dim)
        w = jax.random.uniform(wk, (out_dim, in_dim), jnp.float32, -bound, bound)
        b = jax.random.uniform(bk, (out_dim,), jnp.float32, -bound, bound)
        params.append((w, b))
        in_dim = out_dim
    return params


def prepare_policy_params(params, num_features):
    """Transpose to (in, out), zero-pad output lanes to 128, cast to bf16, and
    pack all biases into a single f32 array. Call ONCE; reuse across steps."""
    weights = []
    out_pads = []
    in_dim, in_pad = num_features, num_features  # first layer: real feature width
    for (w, b) in params:
        out_dim = w.shape[0]
        out_pad = _pad_to(out_dim, _LANE)
        wt = jnp.zeros((in_pad, out_pad), jnp.float32)
        wt = wt.at[:in_dim, :out_dim].set(w.T).astype(jnp.bfloat16)
        weights.append(wt)
        out_pads.append(out_pad)
        in_dim, in_pad = out_dim, out_pad

    max_pad = max(out_pads)
    bias_rows = []
    for li, (_, b) in enumerate(params):
        is_actor = li == len(params) - 1
        pad_val = -1e30 if is_actor else 0.0  # padded actor lanes vanish in softmax
        row = jnp.full((max_pad,), pad_val, jnp.float32).at[:b.shape[0]].set(b)
        bias_rows.append(row)
    bias_packed = jnp.stack(bias_rows)  # (L+1, max_pad) f32

    num_actions = params[-1][0].shape[0]
    return tuple(weights), bias_packed, tuple(out_pads), num_actions


# -----------------------------------------------------------------------------
# Forward wrapper (fast path: only cast/pad x, one pallas_call, slice output)
# -----------------------------------------------------------------------------
def policy_forward(x, prepped):
    weights, bias_packed, out_pads, num_actions = prepped
    batch, num_features = x.shape
    assert weights[0].shape[0] == num_features
    a_pad = out_pads[-1]

    tile_m = _choose_tile_m(batch)
    m_pad = _pad_to(batch, tile_m)
    grid = (m_pad // tile_m,)

    # Input in bf16 with its real feature width (no 128-lane f32 pad copy).
    x_b = x.astype(jnp.bfloat16)
    if m_pad != batch:
        x_b = jnp.pad(x_b, ((0, m_pad - batch), (0, 0)))

    in_specs = [pl.BlockSpec((tile_m, num_features), lambda i: (i, 0))]
    for w in weights:  # weights VMEM-resident (constant block index)
        in_specs.append(pl.BlockSpec(w.shape, lambda i: (0, 0)))
    in_specs.append(pl.BlockSpec(bias_packed.shape, lambda i: (0, 0)))

    out_shape = jax.ShapeDtypeStruct((m_pad, a_pad), jnp.float32)
    out_spec = pl.BlockSpec((tile_m, a_pad), lambda i: (i, 0))

    kernel = functools.partial(_policy_kernel, out_pads)
    out = pl.pallas_call(
        kernel,
        out_shape=out_shape,
        grid=grid,
        in_specs=in_specs,
        out_specs=out_spec,
        compiler_params=pltpu.CompilerParams(
            dimension_semantics=("parallel",)),
    )(x_b, *weights, bias_packed)

    # Slice padded rows / action lanes off outside the kernel.
    return out[:batch, :num_actions]


# -----------------------------------------------------------------------------
# References
# -----------------------------------------------------------------------------
def _reference_forward_f32(x, params):
    # Pure-f32 reference matching the PyTorch module.
    h = x
    for (w, b) in params[:-1]:
        h = jnp.maximum(h @ w.T + b, 0.0)
    aw, ab = params[-1]
    return jax.nn.softmax(h @ aw.T + ab, axis=1)


def _reference_forward_bf16(x, params):
    # Reference mirroring the kernel's numerics (bf16 MXU operands, f32 accum,
    # f32 bias/ReLU epilogue); exact softmax divide (kernel uses approx recip).
    h = x
    for (w, b) in params[:-1]:
        y = jnp.dot(h.astype(jnp.bfloat16), w.T.astype(jnp.bfloat16),
                    preferred_element_type=jnp.float32)
        h = jnp.maximum(y + b, 0.0)
    aw, ab = params[-1]
    logits = jnp.dot(h.astype(jnp.bfloat16), aw.T.astype(jnp.bfloat16),
                     preferred_element_type=jnp.float32) + ab
    return jax.nn.softmax(logits, axis=1)


if __name__ == "__main__":
    # Small shapes consistent with the module's forward: X is (batch, num_features).
    batch = 8
    num_features = 32
    num_actions = 8
    num_layers = 3
    hidden_sizes = 32

    key = jax.random.PRNGKey(0)
    key, xk = jax.random.split(key)
    x = jax.random.normal(xk, (batch, num_features), jnp.float32)

    params = init_policy_params(key, num_features, num_actions, num_layers,
                                hidden_sizes)
    # Hoisted, one-time weight/bias preparation (not in the per-call path).
    prepped = prepare_policy_params(params, num_features)

    policy = policy_forward(x, prepped)
    policy = jax.block_until_ready(policy)

    assert policy.shape == (batch, num_actions)
    # Check against a reference with matching (bf16-MXU) numerics; tolerance
    # loosened slightly for the approximate (EUP) softmax reciprocal.
    ref_bf16 = _reference_forward_bf16(x, params)
    assert jnp.allclose(policy, ref_bf16, atol=1.5e-2, rtol=1.5e-2)
    # Looser sanity check against the pure-f32 PyTorch-equivalent reference.
    ref_f32 = _reference_forward_f32(x, params)
    assert jnp.allclose(policy, ref_f32, atol=3e-2, rtol=3e-2)
    # Rows of a softmax sum to ~1 (approx reciprocal -> loose tolerance).
    assert jnp.allclose(jnp.sum(policy, axis=1), jnp.ones((batch,)), atol=1e-2)

    print("KERNEL_OK")
</pallas_src>

<mosaic_0001>
module attributes {stable_mosaic.version = 11 : i64} {
  func.func @_policy_kernel(%arg0: i32, %arg1: memref<8x32xbf16, #tpu.memory_space<vmem>>, %arg2: memref<32x128xbf16, #tpu.memory_space<vmem>>, %arg3: memref<128x128xbf16, #tpu.memory_space<vmem>>, %arg4: memref<128x128xbf16, #tpu.memory_space<vmem>>, %arg5: memref<128x128xbf16, #tpu.memory_space<vmem>>, %arg6: memref<4x128xf32, #tpu.memory_space<vmem>>, %arg7: memref<8x128xf32, #tpu.memory_space<vmem>>) attributes {dimension_semantics = [#tpu.dimension_semantics<parallel>], iteration_bounds = array<i64: 1>, scalar_prefetch = 0 : i64, scratch_operands = 0 : i64, tpu.core_type = #tpu.core_type<tc>, window_params = [{transform_indices = @transform_0, window_bounds = array<i64: 8, 32>}, {pipeline_mode = #tpu.pipeline_mode<synchronous>, transform_indices = @transform_1, window_bounds = array<i64: 32, 128>}, {pipeline_mode = #tpu.pipeline_mode<synchronous>, transform_indices = @transform_2, window_bounds = array<i64: 128, 128>}, {pipeline_mode = #tpu.pipeline_mode<synchronous>, transform_indices = @transform_3, window_bounds = array<i64: 128, 128>}, {pipeline_mode = #tpu.pipeline_mode<synchronous>, transform_indices = @transform_4, window_bounds = array<i64: 128, 128>}, {pipeline_mode = #tpu.pipeline_mode<synchronous>, transform_indices = @transform_5, window_bounds = array<i64: 4, 128>}, {transform_indices = @transform_6, window_bounds = array<i64: 8, 128>}]} {
    %c0 = arith.constant 0 : index
    %c0_0 = arith.constant 0 : index
    %0 = vector.load %arg1[%c0, %c0_0] : memref<8x32xbf16, #tpu.memory_space<vmem>>, vector<8x32xbf16>
    %c0_1 = arith.constant 0 : index
    %c0_2 = arith.constant 0 : index
    %1 = vector.load %arg2[%c0_1, %c0_2] : memref<32x128xbf16, #tpu.memory_space<vmem>>, vector<32x128xbf16>
    %cst = arith.constant dense<0.000000e+00> : vector<8x128xf32>
    %2 = tpu.matmul %0, %1, %cst {dimension_numbers = #tpu.dot_dimension_numbers<[1], [0], [0], [1], [0, 0, 1, 1], [], []>} : vector<8x32xbf16>, vector<32x128xbf16>, vector<8x128xf32> -> vector<8x128xf32>
    %c0_3 = arith.constant 0 : index
    %c0_4 = arith.constant 0 : index
    %3 = vector.load %arg6[%c0_3, %c0_4] : memref<4x128xf32, #tpu.memory_space<vmem>>, vector<1x128xf32>
    %4 = vector.broadcast %3 : vector<1x128xf32> to vector<8x128xf32>
    %5 = arith.addf %2, %4 : vector<8x128xf32>
    %cst_5 = arith.constant 0.000000e+00 : f32
    %6 = vector.broadcast %cst_5 : f32 to vector<8x128xf32>
    %7 = arith.maximumf %5, %6 : vector<8x128xf32>
    %8 = arith.truncf %7 : vector<8x128xf32> to vector<8x128xbf16>
    %c0_6 = arith.constant 0 : index
    %c0_7 = arith.constant 0 : index
    %9 = vector.load %arg3[%c0_6, %c0_7] : memref<128x128xbf16, #tpu.memory_space<vmem>>, vector<128x128xbf16>
    %cst_8 = arith.constant dense<0.000000e+00> : vector<8x128xf32>
    %10 = tpu.matmul %8, %9, %cst_8 {dimension_numbers = #tpu.dot_dimension_numbers<[1], [0], [0], [1], [0, 0, 1, 1], [], []>} : vector<8x128xbf16>, vector<128x128xbf16>, vector<8x128xf32> -> vector<8x128xf32>
    %c1 = arith.constant 1 : index
    %c0_9 = arith.constant 0 : index
    %11 = vector.load %arg6[%c1, %c0_9] : memref<4x128xf32, #tpu.memory_space<vmem>>, vector<1x128xf32>
    %12 = vector.broadcast %11 : vector<1x128xf32> to vector<8x128xf32>
    %13 = arith.addf %10, %12 : vector<8x128xf32>
    %cst_10 = arith.constant 0.000000e+00 : f32
    %14 = vector.broadcast %cst_10 : f32 to vector<8x128xf32>
    %15 = arith.maximumf %13, %14 : vector<8x128xf32>
    %16 = arith.truncf %15 : vector<8x128xf32> to vector<8x128xbf16>
    %c0_11 = arith.constant 0 : index
    %c0_12 = arith.constant 0 : index
    %17 = vector.load %arg4[%c0_11, %c0_12] : memref<128x128xbf16, #tpu.memory_space<vmem>>, vector<128x128xbf16>
    %cst_13 = arith.constant dense<0.000000e+00> : vector<8x128xf32>
    %18 = tpu.matmul %16, %17, %cst_13 {dimension_numbers = #tpu.dot_dimension_numbers<[1], [0], [0], [1], [0, 0, 1, 1], [], []>} : vector<8x128xbf16>, vector<128x128xbf16>, vector<8x128xf32> -> vector<8x128xf32>
    %c2 = arith.constant 2 : index
    %c0_14 = arith.constant 0 : index
    %19 = vector.load %arg6[%c2, %c0_14] : memref<4x128xf32, #tpu.memory_space<vmem>>, vector<1x128xf32>
    %20 = vector.broadcast %19 : vector<1x128xf32> to vector<8x128xf32>
    %21 = arith.addf %18, %20 : vector<8x128xf32>
    %cst_15 = arith.constant 0.000000e+00 : f32
    %22 = vector.broadcast %cst_15 : f32 to vector<8x128xf32>
    %23 = arith.maximumf %21, %22 : vector<8x128xf32>
    %24 = arith.truncf %23 : vector<8x128xf32> to vector<8x128xbf16>
    %c0_16 = arith.constant 0 : index
    %c0_17 = arith.constant 0 : index
    %25 = vector.load %arg5[%c0_16, %c0_17] : memref<128x128xbf16, #tpu.memory_space<vmem>>, vector<128x128xbf16>
    %cst_18 = arith.constant dense<0.000000e+00> : vector<8x128xf32>
    %26 = tpu.matmul %24, %25, %cst_18 {dimension_numbers = #tpu.dot_dimension_numbers<[1], [0], [0], [1], [0, 0, 1, 1], [], []>} : vector<8x128xbf16>, vector<128x128xbf16>, vector<8x128xf32> -> vector<8x128xf32>
    %c3 = arith.constant 3 : index
    %c0_19 = arith.constant 0 : index
    %27 = vector.load %arg6[%c3, %c0_19] : memref<4x128xf32, #tpu.memory_space<vmem>>, vector<1x128xf32>
    %28 = vector.broadcast %27 : vector<1x128xf32> to vector<8x128xf32>
    %29 = arith.addf %26, %28 : vector<8x128xf32>
    %cst_20 = arith.constant dense<0xFF800000> : vector<8xf32>
    %30 = vector.multi_reduction <maximumf>, %29, %cst_20 [1] : vector<8x128xf32> to vector<8xf32>
    %31 = vector.shape_cast %30 : vector<8xf32> to vector<8x1xf32>
    %32 = vector.broadcast %31 : vector<8x1xf32> to vector<8x128xf32>
    %33 = arith.subf %29, %32 : vector<8x128xf32>
    %34 = math.exp %33 : vector<8x128xf32>
    %cst_21 = arith.constant dense<0.000000e+00> : vector<8xf32>
    %35 = vector.multi_reduction <add>, %34, %cst_21 [1] : vector<8x128xf32> to vector<8xf32>
    %36 = vector.shape_cast %35 : vector<8xf32> to vector<8x1xf32>
    %37 = tpu.reciprocal %36 {approx = true} : vector<8x1xf32> -> vector<8x1xf32>
    %38 = vector.broadcast %37 : vector<8x1xf32> to vector<8x128xf32>
    %39 = arith.mulf %34, %38 : vector<8x128xf32>
    %c0_22 = arith.constant 0 : index
    %c0_23 = arith.constant 0 : index
    %40 = vector.load %arg7[%c0_22, %c0_23] : memref<8x128xf32, #tpu.memory_space<vmem>>, vector<8x128xf32>
    tpu.vector_store %arg7[%c0_22, %c0_23], %39 {strides = array<i32>} : memref<8x128xf32, #tpu.memory_space<vmem>>, vector<8x128xf32>,
    return
  }
  func.func @transform_0(%arg0: i32) -> (i32, i32) {
    %c0_i32 = arith.constant 0 : i32
    %c0_i32_0 = arith.constant 0 : i32
    return %arg0, %c0_i32 : i32, i32
  }
  func.func @transform_1(%arg0: i32) -> (i32, i32) {
    %c0_i32 = arith.constant 0 : i32
    %c0_i32_0 = arith.constant 0 : i32
    %c0_i32_1 = arith.constant 0 : i32
    return %c0_i32, %c0_i32_0 : i32, i32
  }
  func.func @transform_2(%arg0: i32) -> (i32, i32) {
    %c0_i32 = arith.constant 0 : i32
    %c0_i32_0 = arith.constant 0 : i32
    %c0_i32_1 = arith.constant 0 : i32
    return %c0_i32, %c0_i32_0 : i32, i32
  }
  func.func @transform_3(%arg0: i32) -> (i32, i32) {
    %c0_i32 = arith.constant 0 : i32
    %c0_i32_0 = arith.constant 0 : i32
    %c0_i32_1 = arith.constant 0 : i32
    return %c0_i32, %c0_i32_0 : i32, i32
  }
  func.func @transform_4(%arg0: i32) -> (i32, i32) {
    %c0_i32 = arith.constant 0 : i32
    %c0_i32_0 = arith.constant 0 : i32
    %c0_i32_1 = arith.constant 0 : i32
    return %c0_i32, %c0_i32_0 : i32, i32
  }
  func.func @transform_5(%arg0: i32) -> (i32, i32) {
    %c0_i32 = arith.constant 0 : i32
    %c0_i32_0 = arith.constant 0 : i32
    %c0_i32_1 = arith.constant 0 : i32
    return %c0_i32, %c0_i32_0 : i32, i32
  }
  func.func @transform_6(%arg0: i32) -> (i32, i32) {
    %c0_i32 = arith.constant 0 : i32
    %c0_i32_0 = arith.constant 0 : i32
    return %arg0, %c0_i32 : i32, i32
  }
}

</mosaic_0001>

<bundles_post_ra>
// kernel: tpu_custom_call.1
= control target key start
LH: loop header
LB: loop body
LE: loop exit
PB: predicated region body
PF: predicated region fallthrough
CT: control target
= control target key end

     0   :  { %11 = vsyncpa [#allocation3], 0  ;;  %s1001_s0 = inlined_call_operand.hbm [shape: bf16[8,32], index: 0, kind: input, shape index: {}]   ;;  %s1002_s1 = inlined_call_operand.hbm [shape: bf16[32,128], index: 1, kind: input, shape index: {}]   ;;  %s1003_s2 = inlined_call_operand.hbm [shape: bf16[128,128], index: 2, kind: input, shape index: {}]   ;;  %s1004_s3 = inlined_call_operand.hbm [shape: bf16[128,128], index: 3, kind: input, shape index: {}]   ;;  %s1005_s4 = inlined_call_operand.hbm [shape: bf16[128,128], index: 4, kind: input, shape index: {}]   ;;  %s1006_s5 = inlined_call_operand.vmem [shape: f32[4,128], index: 5, kind: input, shape index: {}]   ;;  %s1007_s6 = inlined_call_operand.hbm [shape: f32[8,128], index: 6, kind: output, shape index: {}]  }
   0x1   :  { %12 = vsyncpa [#allocation6], 0 }
   0x2   :  { %13 = vsyncpa [#allocation9], 0 }
   0x3   :  { %14 = vsyncpa [#allocation4], 0  ;;  %s826_s21 = smov [#allocation5]   ;;  %s686_s25 = scalar_lea.hbm %s1002_s1, 256 }
   0x4   :  { %s30_s22 = sshll.u32 %s826_s21, 4  ;;  %p687_p0 = scmp.ne.s32.totalorder %s1002_s1, %s686_s25  ;;  %s31_s22 = int_to_ptr.vmem [resolvable:$true] %s30_s22 }
   0x5   :  { %p690_p1 = scmp.lt.u32.totalorder %s686_s25, %s1002_s1 }
   0x7   :  { %p692_p2 = pnand %p690_p1, %p687_p0 }
   0x9   :  { %695 = shalt.err (!%p692_p2)
}
   0xa   :  { %s696_s30 = scalar_lea.vmem %s31_s22, 256  ;;  %p701_p4 = scmp.lt.s32.totalorder %s31_s22, %s31_s22 }
   0xb   :  { %p697_p3 = scmp.ne.s32.totalorder %s31_s22, %s696_s30  ;;  %p702_p5 = scmp.lt.s32.totalorder %s696_s30, %s696_s30 }
   0xd   :  { %p703_p6 = por %p702_p5, %p701_p4 }
   0xf   :  { %p704_p7 = pnand %p703_p6, %p697_p3 }
  0x11   :  { %707 = shalt.err (!%p704_p7)
}
  0x12   :  { %s827_s7 = smov 64   ;;  %s828_s8 = smov 4  }
  0x13   :  { %36 = dma.hbm_to_vmem [thread:$0]  %s1002_s1, 256, %s31_s22, [#allocation6], %s827_s7, %s827_s7, %s828_s8  }
  0x14   :  { %s829_s11 = smov [#allocation8]   ;;  %s830_s13 = smov [#allocation2]  }
  0x15   :  { %s54_s12 = sshll.u32 %s829_s11, 4  ;;  %s21_s14 = sshll.u32 %s830_s13, 4  ;;  %s55_s12 = int_to_ptr.vmem [resolvable:$true] %s54_s12  ;;  %s22_s14 = int_to_ptr.vmem [resolvable:$true] %s21_s14 }
  0x16   :  { %s708_s17 = scalar_lea.hbm %s1004_s3, 1024 }
  0x17   :  { %p709_p8 = scmp.ne.s32.totalorder %s1004_s3, %s708_s17  ;;  %p712_p9 = scmp.lt.u32.totalorder %s708_s17, %s1004_s3 }
  0x19   :  { %p714_p10 = pnand %p712_p9, %p709_p8 }
  0x1b   :  { %717 = shalt.err (!%p714_p10)
}
  0x1c   :  { %s718_s1 = scalar_lea.vmem %s55_s12, 1024  ;;  %p723_p12 = scmp.lt.s32.totalorder %s55_s12, %s55_s12 }
  0x1d   :  { %p719_p11 = scmp.ne.s32.totalorder %s55_s12, %s718_s1  ;;  %p724_p13 = scmp.lt.s32.totalorder %s718_s1, %s718_s1 }
  0x1f   :  { %p725_p0 = por %p724_p13, %p723_p12 }
  0x21   :  { %p726_p1 = pnand %p725_p0, %p719_p11 }
  0x23   :  { %729 = shalt.err (!%p726_p1)
}
  0x24   :  { %60 = dma.hbm_to_vmem [thread:$0]  %s1004_s3, 1024, %s55_s12, [#allocation9], %s827_s7, %s827_s7, %s828_s8  }
  0x25   :  { %s730_s26 = scalar_lea.hbm %s1001_s0, 64 }
  0x26   :  { %p731_p2 = scmp.ne.s32.totalorder %s1001_s0, %s730_s26  ;;  %p734_p3 = scmp.lt.u32.totalorder %s730_s26, %s1001_s0 }
  0x28   :  { %p736_p4 = pnand %p734_p3, %p731_p2 }
  0x2a   :  { %739 = shalt.err (!%p736_p4)
}
  0x2b   :  { %s740_s9 = scalar_lea.vmem %s22_s14, 64  ;;  %p745_p6 = scmp.lt.s32.totalorder %s22_s14, %s22_s14 }
  0x2c   :  { %p741_p5 = scmp.ne.s32.totalorder %s22_s14, %s740_s9  ;;  %p746_p7 = scmp.lt.s32.totalorder %s740_s9, %s740_s9 }
  0x2e   :  { %p747_p8 = por %p746_p7, %p745_p6 }
  0x30   :  { %p748_p9 = pnand %p747_p8, %p741_p5 }
  0x32   :  { %751 = shalt.err (!%p748_p9)
}
  0x33   :  { %24 = dma.hbm_to_vmem [thread:$0]  %s1001_s0, 64, %s22_s14, [#allocation3]  }
  0x34   :  { %s831_s11 = smov [#allocation7]   ;;  %s832_s13 = smov [#allocation10]  }
  0x35   :  { %s42_s12 = sshll.u32 %s831_s11, 4  ;;  %s66_s15 = sshll.u32 %s832_s13, 4  ;;  %s43_s12 = int_to_ptr.vmem [resolvable:$true] %s42_s12  ;;  %s67_s15 = int_to_ptr.vmem [resolvable:$true] %s66_s15 }
  0x36   :  { %s752_s18 = scalar_lea.hbm %s1003_s2, 1024 }
  0x37   :  { %p753_p10 = scmp.ne.s32.totalorder %s1003_s2, %s752_s18  ;;  %p756_p11 = scmp.lt.u32.totalorder %s752_s18, %s1003_s2 }
  0x39   :  { %p758_p12 = pnand %p756_p11, %p753_p10 }
  0x3b   :  { %761 = shalt.err (!%p758_p12)
}
  0x3c   :  { %s762_s0 = scalar_lea.vmem %s43_s12, 1024  ;;  %p767_p0 = scmp.lt.s32.totalorder %s43_s12, %s43_s12 }
  0x3d   :  { %p763_p13 = scmp.ne.s32.totalorder %s43_s12, %s762_s0  ;;  %p768_p1 = scmp.lt.s32.totalorder %s762_s0, %s762_s0 }
  0x3f   :  { %p769_p2 = por %p768_p1, %p767_p0 }
  0x41   :  { %p770_p3 = pnand %p769_p2, %p763_p13 }
  0x43   :  { %773 = shalt.err (!%p770_p3)
}
  0x44   :  { %48 = dma.hbm_to_vmem [thread:$0]  %s1003_s2, 1024, %s43_s12, [#allocation6], %s827_s7, %s827_s7, %s828_s8  }
  0x45   :  { %s774_s25 = scalar_lea.hbm %s1005_s4, 1024 }
  0x46   :  { %p775_p4 = scmp.ne.s32.totalorder %s1005_s4, %s774_s25  ;;  %p778_p5 = scmp.lt.u32.totalorder %s774_s25, %s1005_s4 }
  0x48   :  { %p780_p6 = pnand %p778_p5, %p775_p4 }
  0x4a   :  { %783 = shalt.err (!%p780_p6)
}
  0x4b   :  { %s784_s30 = scalar_lea.vmem %s67_s15, 1024  ;;  %p789_p8 = scmp.lt.s32.totalorder %s67_s15, %s67_s15 }
  0x4c   :  { %p785_p7 = scmp.ne.s32.totalorder %s67_s15, %s784_s30  ;;  %p790_p9 = scmp.lt.s32.totalorder %s784_s30, %s784_s30 }
  0x4e   :  { %p791_p10 = por %p790_p9, %p789_p8 }
  0x50   :  { %p792_p11 = pnand %p791_p10, %p785_p7 }
  0x52   :  { %795 = shalt.err (!%p792_p11)
}
  0x53   :  { %72 = dma.hbm_to_vmem [thread:$0]  %s1005_s4, 1024, %s67_s15, [#allocation9], %s827_s7, %s827_s7, %s828_s8  }
  0x54   :  { %818 = dma.done.wait [#allocation3], 64  }
  0x55   :  { %819 = vsyncadd [#allocation3], 4294967232 }
  0x56   :  { %820 = dma.done.wait [#allocation6], 1280  }
  0x57   :  { %821 = vsyncadd [#allocation6], 4294966016 }
  0x58   :  { %822 = dma.done.wait [#allocation9], 2048  }
  0x59   :  { %823 = vsyncadd [#allocation9], 4294965248  ;;  %v833_v0 = vmov 0.0   ;;  %vm834_vm0 = vmmov 0   ;;  %v656_v1 = vld [vmem:[#allocation5] sm:$0xff]   ;;  %v657_v2 = vld [vmem:[#allocation5 + $0x8] sm:$0xff]  }
  0x5a   :  { %578 = vmatprep.subr.bf16.mxu0 %v833_v0  ;;  %582 = vmatprep.mubr.msk.bf16.mxu0 %vm834_vm0, %v833_v0  ;;  %v658_v3 = vld [vmem:[#allocation7] sm:$0xff]   ;;  %vm113_vm1 = vcmask 261120   ;;  %v659_v4 = vld [vmem:[#allocation7 + $0x8] sm:$0xff]   ;;  %v660_v6 = vld [vmem:[#allocation7 + $0x10] sm:$0xff]   ;;  %s835_s15 = smov [#allocation11]  }
  0x5b   :  { %586 = vmatprep.subr.bf16.mxu1 %v833_v0  ;;  %602 = vmatprep.mubr.msk.bf16.mxu1 %vm834_vm0, %v833_v0  ;;  %v91_v5 = vld [vmem:[#allocation2] sm:$0xf]  ;;  %v661_v7 = vld [vmem:[#allocation7 + $0x18] sm:$0xff]   ;;  %v662_v8 = vld [vmem:[#allocation7 + $0x20] sm:$0xff]   ;;  %s506_s16 = sshll.u32 %s835_s15, 4  ;;  %s507_s16 = int_to_ptr.vmem [resolvable:$true] %s506_s16 }
  0x5c   :  { %579 = vmatpush3.bf16.msra.mxu0 %v656_v1  ;;  %587 = vmatpush3.bf16.msra.mxu1 %v658_v3  ;;  %v663_v9 = vld [vmem:[#allocation7 + $0x28] sm:$0xff]   ;;  %v664_v10 = vld [vmem:[#allocation7 + $0x30] sm:$0xff]   ;;  %v665_v11 = vld [vmem:[#allocation7 + $0x38] sm:$0xff]   ;;  %p801_p13 = scmp.lt.s32.totalorder %s507_s16, %s507_s16 }
  0x5d   :  { %580 = vmatprep.subr.bf16.mxu0 %v833_v0  ;;  %588 = vmatprep.subr.bf16.mxu1 %v833_v0  ;;  %v666_v12 = vld [vmem:[#allocation8] sm:$0xff]   ;;  %v667_v13 = vld [vmem:[#allocation8 + $0x8] sm:$0xff]   ;;  %v668_v14 = vld [vmem:[#allocation8 + $0x10] sm:$0xff]  }
  0x5e   :  { %v669_v15 = vld [vmem:[#allocation8 + $0x18] sm:$0xff]   ;;  %v670_v16 = vld [vmem:[#allocation8 + $0x20] sm:$0xff]   ;;  %v671_v17 = vld [vmem:[#allocation8 + $0x28] sm:$0xff]  }
  0x5f   :  { %v517_v18 = vld [vmem:[%s1006_s5] ss:$0 sm:$0xff]  ;;  %v672_v26 = vld [vmem:[#allocation8 + $0x30] sm:$0xff]   ;;  %v673_v27 = vld [vmem:[#allocation8 + $0x38] sm:$0xff]  }
  0x60   :  { %581 = vmatpush3.bf16.msra.mxu0 %v657_v2  ;;  %589 = vmatpush3.bf16.msra.mxu1 %v659_v4  ;;  %v674_v28 = vld [vmem:[#allocation10] sm:$0xff]   ;;  %v675_v29 = vld [vmem:[#allocation10 + $0x8] sm:$0xff]   ;;  %v676_v30 = vld [vmem:[#allocation10 + $0x10] sm:$0xff]  }
  0x61   :  { %606 = vmatprep.subr.bf16.mxu0 %v833_v0  ;;  %590 = vmatprep.subr.bf16.mxu1 %v833_v0  ;;  %v677_v31 = vld [vmem:[#allocation10 + $0x18] sm:$0xff]   ;;  %v678_v32 = vld [vmem:[#allocation10 + $0x20] sm:$0xff]   ;;  %v679_v33 = vld [vmem:[#allocation10 + $0x28] sm:$0xff]  }
  0x62   :  { %v521_v34 = vld [vmem:[%s1006_s5 + $0x1] ss:$0 sm:$0xff]  ;;  %v680_v42 = vld [vmem:[#allocation10 + $0x30] sm:$0xff]   ;;  %v681_v43 = vld [vmem:[#allocation10 + $0x38] sm:$0xff]  }
  0x63   :  { %583 = vmatmul.mubr.msk.bf16.vlgmr.msra.gmra.mrb[0].mxu0 %vm113_vm1, %v91_v5  ;;  %v530_v44 = vld [vmem:[%s1006_s5 + $0x2] ss:$0 sm:$0xff]  ;;  %v539_v52 = vld [vmem:[%s1006_s5 + $0x3] ss:$0 sm:$0xff]  ;;  %s796_s5 = scalar_lea.vmem %s507_s16, 128 }
  0x64   :  { %622 = vmatprep.mubr.msk.bf16.mxu0 %vm834_vm0, %v833_v0  ;;  %591 = vmatpush3.bf16.msra.mxu1 %v660_v6  ;;  %p797_p12 = scmp.ne.s32.totalorder %s507_s16, %s796_s5  ;;  %p802_p0 = scmp.lt.s32.totalorder %s796_s5, %s796_s5 }
  0x65   :  { %592 = vmatprep.subr.bf16.mxu1 %v833_v0  ;;  %607 = vmatpush3.bf16.msra.mxu0 %v666_v12 }
  0x66   :  { %608 = vmatprep.subr.bf16.mxu0 %v833_v0  ;;  %p803_p1 = por %p802_p0, %p801_p13 }
  0x68   :  { %593 = vmatpush3.bf16.msra.mxu1 %v661_v7  ;;  %p804_p2 = pnand %p803_p1, %p797_p12 }
  0x69   :  { %594 = vmatprep.subr.bf16.mxu1 %v833_v0  ;;  %609 = vmatpush3.bf16.msra.mxu0 %v667_v13 }
  0x6a   :  { %610 = vmatprep.subr.bf16.mxu0 %v833_v0 }
  0x6c   :  { %595 = vmatpush3.bf16.msra.mxu1 %v662_v8 }
  0x6d   :  { %596 = vmatprep.subr.bf16.mxu1 %v833_v0  ;;  %611 = vmatpush3.bf16.msra.mxu0 %v668_v14 }
  0x6e   :  { %612 = vmatprep.subr.bf16.mxu0 %v833_v0 }
  0x70   :  { %597 = vmatpush3.bf16.msra.mxu1 %v663_v9 }
  0x71   :  { %598 = vmatprep.subr.bf16.mxu1 %v833_v0  ;;  %613 = vmatpush3.bf16.msra.mxu0 %v669_v15 }
  0x72   :  { %614 = vmatprep.subr.bf16.mxu0 %v833_v0 }
  0x74   :  { %599 = vmatpush3.bf16.msra.mxu1 %v664_v10 }
  0x75   :  { %600 = vmatprep.subr.bf16.mxu1 %v833_v0  ;;  %615 = vmatpush3.bf16.msra.mxu0 %v670_v16 }
  0x76   :  { %616 = vmatprep.subr.bf16.mxu0 %v833_v0 }
  0x78   :  { %601 = vmatpush3.bf16.msra.mxu1 %v665_v11 }
  0x79   :  { %626 = vmatprep.subr.bf16.mxu1 %v833_v0  ;;  %617 = vmatpush3.bf16.msra.mxu0 %v671_v17 }
  0x7a   :  { %618 = vmatprep.subr.bf16.mxu0 %v833_v0 }
  0x7d   :  { %619 = vmatpush3.bf16.msra.mxu0 %v672_v26 }
  0x7e   :  { %620 = vmatprep.subr.bf16.mxu0 %v833_v0 }
  0x81   :  { %621 = vmatpush3.bf16.msra.mxu0 %v673_v27 }
 0x136   :  { %v151_v19 = vpop.f32.mrb[0].mxu0 }
 0x137   :  { %v152_v20 = vadd.f32 %v517_v18, %v151_v19  ;;  %v584_v21 = vpop.f32.mrb[1].mxu0 }
 0x138   :  { %v154_v22 = vpop.f32.mrb[2].mxu0 }
 0x139   :  { %v157_v23 = vmax.f32 %v152_v20, 0.0  ;;  %v585_v24 = vpop.f32.mrb[3].mxu0 }
 0x13b   :  { %v158_v25 = vpack.c.bf16 %v157_v23, %v157_v23 }
 0x13d   :  { %603 = vmatmul.mubr.bf16.vlgmr.msra.gmra.mrb[0].mxu1 %v158_v25 }
 0x13e   :  { %642 = vmatprep.mubr.msk.bf16.mxu1 %vm834_vm0, %v833_v0  ;;  %627 = vmatpush3.bf16.msra.mxu1 %v674_v28 }
 0x13f   :  { %628 = vmatprep.subr.bf16.mxu1 %v833_v0 }
 0x142   :  { %629 = vmatpush3.bf16.msra.mxu1 %v675_v29 }
 0x143   :  { %630 = vmatprep.subr.bf16.mxu1 %v833_v0 }
 0x146   :  { %631 = vmatpush3.bf16.msra.mxu1 %v676_v30 }
 0x147   :  { %632 = vmatprep.subr.bf16.mxu1 %v833_v0 }
 0x14a   :  { %633 = vmatpush3.bf16.msra.mxu1 %v677_v31 }
 0x14b   :  { %634 = vmatprep.subr.bf16.mxu1 %v833_v0 }
 0x14e   :  { %635 = vmatpush3.bf16.msra.mxu1 %v678_v32 }
 0x14f   :  { %636 = vmatprep.subr.bf16.mxu1 %v833_v0 }
 0x152   :  { %637 = vmatpush3.bf16.msra.mxu1 %v679_v33 }
 0x153   :  { %638 = vmatprep.subr.bf16.mxu1 %v833_v0 }
 0x156   :  { %639 = vmatpush3.bf16.msra.mxu1 %v680_v42 }
 0x157   :  { %640 = vmatprep.subr.bf16.mxu1 %v833_v0 }
 0x15a   :  { %641 = vmatpush3.bf16.msra.mxu1 %v681_v43 }
 0x210   :  { %v262_v35 = vpop.f32.mrb[0].mxu1 }
 0x211   :  { %v263_v36 = vadd.f32 %v521_v34, %v262_v35  ;;  %v604_v37 = vpop.f32.mrb[1].mxu1 }
 0x212   :  { %v265_v38 = vpop.f32.mrb[2].mxu1 }
 0x213   :  { %v268_v39 = vmax.f32 %v263_v36, 0.0  ;;  %v605_v40 = vpop.f32.mrb[3].mxu1 }
 0x215   :  { %v269_v41 = vpack.c.bf16 %v268_v39, %v268_v39 }
 0x217   :  { %623 = vmatmul.mubr.bf16.vlgmr.msra.gmra.mrb[4].mxu0 %v269_v41 }
 0x2ea   :  { %v373_v45 = vpop.f32.mrb[4].mxu0 }
 0x2eb   :  { %v374_v46 = vadd.f32 %v530_v44, %v373_v45  ;;  %v624_v47 = vpop.f32.mrb[5].mxu0 }
 0x2ec   :  { %v376_v48 = vpop.f32.mrb[6].mxu0 }
 0x2ed   :  { %v379_v49 = vmax.f32 %v374_v46, 0.0  ;;  %v625_v50 = vpop.f32.mrb[7].mxu0 }
 0x2ef   :  { %v380_v51 = vpack.c.bf16 %v379_v49, %v379_v49 }
 0x2f1   :  { %643 = vmatmul.mubr.bf16.vlgmr.msra.gmra.mrb[4].mxu1 %v380_v51 }
 0x3c4   :  { %v484_v53 = vpop.f32.mrb[4].mxu1 }
 0x3c5   :  { %v485_v54 = vadd.f32 %v539_v52, %v484_v53  ;;  %v644_v55 = vpop.f32.mrb[5].mxu1 }
 0x3c6   :  { %v487_v56 = vpop.f32.mrb[6].mxu1 }
 0x3c7   :  { %490 = vmax.xlane.f32.xlu0 %v485_v54  ;;  %v645_v57 = vpop.f32.mrb[7].mxu1 }
 0x454   :  { %v491_v58 = vpop.xlane.xlu0 %490 }
 0x455   :  { %v492_v59 = vsub.f32 %v485_v54, %v491_v58 }
 0x457   :  { %v493_v60 = vmul.f32 1.442695, %v492_v59 }
 0x459   :  { %682 = vpow2.f32 %v493_v60 }
 0x463   :  { %v683_v61 = vpop.eup %682 }
 0x464   :  { %495 = vadd.xlane.f32.xlu0 %v683_v61 }
 0x4f1   :  { %v496_v62 = vpop.xlane.xlu0 %495 }
 0x4f2   :  { %684 = vrcp.f32 %v496_v62 }
 0x4fc   :  { %v685_v63 = vpop.eup %684 }
 0x4fd   :  { %v498_v0 = vmul.f32 %v685_v63, %v683_v61 }
 0x4ff   :  { %499 = vst [vmem:[#allocation11] sm:$0xff] %v498_v0 }
 0x500   :  { %807 = shalt.err (!%p804_p2)
}
 0x501   :  { %s808_s19 = scalar_lea.hbm %s1007_s6, 128 }
 0x502   :  { %p809_p3 = scmp.ne.s32.totalorder %s1007_s6, %s808_s19  ;;  %p812_p4 = scmp.lt.u32.totalorder %s808_s19, %s1007_s6 }
 0x504   :  { %p814_p5 = pnand %p812_p4, %p809_p3 }
 0x506   :  { %817 = shalt.err (!%p814_p5)
}
 0x507   :  { %509 = dma.vmem_to_hbm [thread:$0]  %s507_s16, 128, %s1007_s6, [#allocation4]  }
 0x508   :  { %824 = dma.done.wait [#allocation4], 128  }
 0x509   :  { %825 = vsyncadd [#allocation4], 4294967168 }
 0x50a   :  { %513 = vsyncpa [#allocation3], 1 }
 0x50b   :  { %514 = vsyncpa [#allocation6], 1 }
 0x50c   :  { %515 = vsyncpa [#allocation9], 1 }
 0x50d   :  { %516 = vsyncpa [#allocation4], 1 }

</bundles_post_ra>
